<compile_context>
chip_gen: v6e
topology: v6e:2x2x1
jax: 0.10.0
libtpu: 0.0.40
codegen_flags: <defaults>
</compile_context>

<pallas_src>
import jax
import jax.numpy as jnp
from jax.experimental import pallas as pl
from jax.experimental.pallas import tpu as pltpu

# Problem sizes (small, consistent with the module's forward). Batch chosen so
# the fused (n, l) lane axis is exactly 128 wide.
N, C_IN, C_OUT, L = 8, 4, 6, 16
K, DIL = 3, 1                       # kernel_size=3, dilation=1 (module defaults)
EPS = 1e-5                          # BatchNorm1d default eps
NL = N * L                          # 128 == one full lane dimension
assert NL % 128 == 0


def convblock_kernel(x_ref, w_ref, gb_ref, o_ref):
    # x_ref:  (C_IN, NL)       lane index p = n*L + l  (lane-dense: NL == 128)
    # w_ref:  (C_OUT, K*C_IN)  column index = k*C_IN + ci
    # gb_ref: (C_IN, 2)        packed [gamma | beta]   (single tiny DMA)
    # o_ref:  (C_OUT, NL)      conv output only; concat happens in the wrapper
    x = x_ref[...]                                           # (C_IN, NL) f32
    gb = gb_ref[...]
    gamma = gb[:, 0:1]                                       # (C_IN, 1)
    beta = gb[:, 1:2]                                        # (C_IN, 1)

    # --- BatchNorm1d (training-mode batch stats over N and L == lane axis),
    #     folded into one per-channel scale/offset; rsqrt on the EUP ---
    mean = jnp.mean(x, axis=1, keepdims=True)                # (C_IN, 1)
    var = jnp.mean((x - mean) ** 2, axis=1, keepdims=True)   # biased, as torch
    scale = gamma * jax.lax.rsqrt(var + EPS)
    offs = beta - mean * scale
    # --- BN + ReLU ---
    xr = jnp.maximum(x * scale + offs, 0.0)                  # (C_IN, NL)

    # --- Conv1d (stride=1, padding='same', dilation=DIL, no bias) as a single
    #     im2col matmul.  Taps are lane-rotated copies of xr (pltpu.roll, XLU);
    #     positions that would read into the 'same' padding or across a sample
    #     boundary of the fused N*L axis are zeroed by the l-index mask, which
    #     also covers the rotation wrap-around. ---
    l_idx = jax.lax.broadcasted_iota(jnp.int32, (C_IN, NL), 1) % L
    taps = []
    for k in range(K):                                       # static, unrolled
        s = (k - K // 2) * DIL                               # tap offset
        if s == 0:
            tap = xr
        else:
            tap = pltpu.roll(xr, shift=(-s) % NL, axis=1)    # tap[p] = xr[p+s]
            if s > 0:
                tap = jnp.where(l_idx < L - s, tap, 0.0)
            else:
                tap = jnp.where(l_idx >= -s, tap, 0.0)
        taps.append(tap)
    taps = jnp.concatenate(taps, axis=0)                     # (K*C_IN, NL)
    conv = jnp.dot(w_ref[...], taps, preferred_element_type=jnp.float32)
    o_ref[...] = conv.astype(o_ref.dtype)                    # lane-dense store


def convblock(x, w, gamma, beta):
    """x: (N, C_IN, L); w: (C_OUT, C_IN, K); gamma/beta: (C_IN,)."""
    # Lane-dense presentation: channels -> sublanes, fused (n, l) -> lanes.
    x2 = jnp.transpose(x, (1, 0, 2)).reshape(C_IN, NL)
    # Weight as (C_OUT, K*C_IN) with column index k*C_IN + ci.
    w2 = jnp.transpose(w, (0, 2, 1)).reshape(C_OUT, K * C_IN)
    gb = jnp.stack([gamma, beta], axis=1).astype(jnp.float32)  # (C_IN, 2)
    conv2 = pl.pallas_call(
        convblock_kernel,
        out_shape=jax.ShapeDtypeStruct((C_OUT, NL), x.dtype),
        in_specs=[pl.BlockSpec(memory_space=pltpu.MemorySpace.VMEM)] * 3,
        out_specs=pl.BlockSpec(memory_space=pltpu.MemorySpace.VMEM),
    )(x2, w2, gb)
    out = jnp.transpose(conv2.reshape(C_OUT, N, L), (1, 0, 2))  # (N, C_OUT, L)
    # torch.cat([x, out], dim=1) done wrapper-side: avoids the sublane-unaligned
    # offset-C_IN slice store and the redundant x pass-through writeback.
    return jnp.concatenate([x, out], axis=1)


def reference(x, w, gamma, beta):
    """Pure-JAX reference mirroring the PyTorch forward (train-mode BN)."""
    mean = jnp.mean(x, axis=(0, 2), keepdims=True)
    var = jnp.mean((x - mean) ** 2, axis=(0, 2), keepdims=True)
    xhat = (x - mean) / jnp.sqrt(var + EPS)
    xhat = xhat * gamma[None, :, None] + beta[None, :, None]
    xr = jnp.maximum(xhat, 0.0)
    out = jax.lax.conv_general_dilated(
        xr, w, window_strides=(1,), padding="SAME",
        rhs_dilation=(DIL,), dimension_numbers=("NCH", "OIH", "NCH"))
    return jnp.concatenate([x, out], axis=1)


if __name__ == "__main__":
    key = jax.random.PRNGKey(0)
    kx, kw, kg, kb = jax.random.split(key, 4)

    x = jax.random.normal(kx, (N, C_IN, L), jnp.float32)
    # Deterministic synthetic parameters (conv has no bias in the module).
    w = jax.random.normal(kw, (C_OUT, C_IN, K), jnp.float32) * 0.1
    gamma = 1.0 + 0.1 * jax.random.normal(kg, (C_IN,), jnp.float32)
    beta = 0.1 * jax.random.normal(kb, (C_IN,), jnp.float32)

    out = jax.block_until_ready(convblock(x, w, gamma, beta))
    ref = reference(x, w, gamma, beta)
    assert out.shape == (N, C_IN + C_OUT, L), out.shape
    assert jnp.allclose(out, ref, atol=1e-4, rtol=1e-4), \
        float(jnp.max(jnp.abs(out - ref)))
    print("KERNEL_OK")
</pallas_src>

<mosaic_0001>
module attributes {stable_mosaic.version = 11 : i64} {
  func.func @convblock_kernel(%arg0: memref<4x128xf32, #tpu.memory_space<vmem>>, %arg1: memref<6x12xf32, #tpu.memory_space<vmem>>, %arg2: memref<4x2xf32, #tpu.memory_space<vmem>>, %arg3: memref<6x128xf32, #tpu.memory_space<vmem>>) attributes {dimension_semantics = [], scalar_prefetch = 0 : i64, scratch_operands = 0 : i64, tpu.core_type = #tpu.core_type<tc>} {
    %c0 = arith.constant 0 : index
    %c0_0 = arith.constant 0 : index
    %0 = vector.load %arg0[%c0, %c0_0] : memref<4x128xf32, #tpu.memory_space<vmem>>, vector<4x128xf32>
    %c0_1 = arith.constant 0 : index
    %c0_2 = arith.constant 0 : index
    %1 = vector.load %arg2[%c0_1, %c0_2] : memref<4x2xf32, #tpu.memory_space<vmem>>, vector<4x2xf32>
    %2 = vector.extract_strided_slice %1 {offsets = [0, 0], sizes = [4, 1], strides = [1, 1]} : vector<4x2xf32> to vector<4x1xf32>
    %3 = vector.extract_strided_slice %1 {offsets = [0, 1], sizes = [4, 1], strides = [1, 1]} : vector<4x2xf32> to vector<4x1xf32>
    %cst = arith.constant dense<0.000000e+00> : vector<4xf32>
    %4 = vector.multi_reduction <add>, %0, %cst [1] : vector<4x128xf32> to vector<4xf32>
    %5 = vector.shape_cast %4 : vector<4xf32> to vector<4x1xf32>
    %cst_3 = arith.constant 1.280000e+02 : f32
    %6 = vector.broadcast %cst_3 : f32 to vector<4x1xf32>
    %7 = arith.divf %5, %6 : vector<4x1xf32>
    %8 = vector.broadcast %7 : vector<4x1xf32> to vector<4x128xf32>
    %9 = arith.subf %0, %8 : vector<4x128xf32>
    %10 = arith.mulf %9, %9 : vector<4x128xf32>
    %cst_4 = arith.constant dense<0.000000e+00> : vector<4xf32>
    %11 = vector.multi_reduction <add>, %10, %cst_4 [1] : vector<4x128xf32> to vector<4xf32>
    %12 = vector.shape_cast %11 : vector<4xf32> to vector<4x1xf32>
    %cst_5 = arith.constant 1.280000e+02 : f32
    %13 = vector.broadcast %cst_5 : f32 to vector<4x1xf32>
    %14 = arith.divf %12, %13 : vector<4x1xf32>
    %cst_6 = arith.constant 9.99999974E-6 : f32
    %15 = vector.broadcast %cst_6 : f32 to vector<4x1xf32>
    %16 = arith.addf %14, %15 : vector<4x1xf32>
    %17 = math.rsqrt %16 : vector<4x1xf32>
    %18 = arith.mulf %2, %17 : vector<4x1xf32>
    %19 = arith.mulf %7, %18 : vector<4x1xf32>
    %20 = arith.subf %3, %19 : vector<4x1xf32>
    %21 = vector.broadcast %18 : vector<4x1xf32> to vector<4x128xf32>
    %22 = arith.mulf %0, %21 : vector<4x128xf32>
    %23 = vector.broadcast %20 : vector<4x1xf32> to vector<4x128xf32>
    %24 = arith.addf %22, %23 : vector<4x128xf32>
    %cst_7 = arith.constant 0.000000e+00 : f32
    %25 = vector.broadcast %cst_7 : f32 to vector<4x128xf32>
    %26 = arith.maximumf %24, %25 : vector<4x128xf32>
    %27 = tpu.iota {dimensions = array<i32: 1>} : vector<4x128xi32>
    %c16_i32 = arith.constant 16 : i32
    %c0_i32 = arith.constant 0 : i32
    %28 = arith.cmpi eq, %c16_i32, %c0_i32 : i32
    %c1_i32 = arith.constant 1 : i32
    %29 = arith.select %28, %c1_i32, %c16_i32 : i32
    %30 = vector.broadcast %29 : i32 to vector<4x128xi32>
    %31 = arith.remsi %27, %30 : vector<4x128xi32>
    %c0_i32_8 = arith.constant 0 : i32
    %32 = vector.broadcast %c0_i32_8 : i32 to vector<4x128xi32>
    %33 = arith.cmpi ne, %31, %32 : vector<4x128xi32>
    %c0_i32_9 = arith.constant 0 : i32
    %34 = vector.broadcast %c0_i32_9 : i32 to vector<4x128xi32>
    %35 = arith.cmpi slt, %31, %34 : vector<4x128xi32>
    %c0_i32_10 = arith.constant 0 : i32
    %36 = arith.cmpi slt, %29, %c0_i32_10 : i32
    %37 = vector.broadcast %36 : i1 to vector<4x128xi1>
    %38 = vector.broadcast %37 : vector<4x128xi1> to vector<4x128xi1>
    %39 = arith.xori %35, %38 : vector<4x128xi1>
    %40 = arith.andi %39, %33 : vector<4x128xi1>
    %41 = vector.broadcast %29 : i32 to vector<4x128xi32>
    %42 = arith.addi %31, %41 : vector<4x128xi32>
    %43 = arith.select %40, %42, %31 : vector<4x128xi1>, vector<4x128xi32>
    %c1_i32_11 = arith.constant 1 : i32
    %44 = tpu.dynamic_rotate %26 by %c1_i32_11 dim 1 : vector<4x128xf32>, i32 -> vector<4x128xf32>
    %c1_i32_12 = arith.constant 1 : i32
    %45 = vector.broadcast %c1_i32_12 : i32 to vector<4x128xi32>
    %46 = arith.cmpi sge, %43, %45 : vector<4x128xi32>
    %cst_13 = arith.constant 0.000000e+00 : f32
    %47 = vector.broadcast %cst_13 : f32 to vector<4x128xf32>
    %48 = arith.select %46, %44, %47 : vector<4x128xi1>, vector<4x128xf32>
    %c127_i32 = arith.constant 127 : i32
    %49 = tpu.dynamic_rotate %26 by %c127_i32 dim 1 : vector<4x128xf32>, i32 -> vector<4x128xf32>
    %c15_i32 = arith.constant 15 : i32
    %50 = vector.broadcast %c15_i32 : i32 to vector<4x128xi32>
    %51 = arith.cmpi slt, %43, %50 : vector<4x128xi32>
    %cst_14 = arith.constant 0.000000e+00 : f32
    %52 = vector.broadcast %cst_14 : f32 to vector<4x128xf32>
    %53 = arith.select %51, %49, %52 : vector<4x128xi1>, vector<4x128xf32>
    %54 = tpu.concatenate %48, %26, %53 in 0 : vector<4x128xf32>, vector<4x128xf32>, vector<4x128xf32> -> vector<12x128xf32>
    %c0_15 = arith.constant 0 : index
    %c0_16 = arith.constant 0 : index
    %55 = vector.load %arg1[%c0_15, %c0_16] : memref<6x12xf32, #tpu.memory_space<vmem>>, vector<6x12xf32>
    %cst_17 = arith.constant dense<0.000000e+00> : vector<6x128xf32>
    %56 = tpu.matmul %55, %54, %cst_17 {dimension_numbers = #tpu.dot_dimension_numbers<[1], [0], [0], [1], [0, 0, 1, 1], [], []>} : vector<6x12xf32>, vector<12x128xf32>, vector<6x128xf32> -> vector<6x128xf32>
    %c0_18 = arith.constant 0 : index
    %c0_19 = arith.constant 0 : index
    %57 = vector.load %arg3[%c0_18, %c0_19] : memref<6x128xf32, #tpu.memory_space<vmem>>, vector<6x128xf32>
    tpu.vector_store %arg3[%c0_18, %c0_19], %56 {strides = array<i32>} : memref<6x128xf32, #tpu.memory_space<vmem>>, vector<6x128xf32>,
    return
  }
}

</mosaic_0001>

<bundles_post_ra>
// kernel: tpu_custom_call.1
= control target key start
LH: loop header
LB: loop body
LE: loop exit
PB: predicated region body
PF: predicated region fallthrough
CT: control target
= control target key end

     0   :  { %8 = vsyncpa [#allocation3], 0  ;;  %s295_s0 = inlined_call_operand.vmem [shape: f32[4,128], index: 0, kind: input, shape index: {}]   ;;  %s296_s1 = inlined_call_operand.hbm [shape: f32[6,12], index: 1, kind: input, shape index: {}]   ;;  %s297_s2 = inlined_call_operand.vmem [shape: f32[4,2], index: 2, kind: input, shape index: {}]   ;;  %s298_s3 = inlined_call_operand.hbm [shape: f32[6,128], index: 3, kind: output, shape index: {}]  }
   0x1   :  { %9 = vsyncpa [#allocation4], 0  ;;  %s251_s12 = smov [#allocation2]  }
   0x2   :  { %s18_s13 = sshll.u32 %s251_s12, 4  ;;  %s19_s13 = int_to_ptr.vmem [resolvable:$true] %s18_s13 }
   0x3   :  { %s215_s14 = scalar_lea.vmem %s19_s13, 128  ;;  %p220_p1 = scmp.lt.s32.totalorder %s19_s13, %s19_s13 }
   0x4   :  { %p216_p0 = scmp.ne.s32.totalorder %s19_s13, %s215_s14  ;;  %p221_p2 = scmp.lt.s32.totalorder %s215_s14, %s215_s14 }
   0x6   :  { %p222_p3 = por %p221_p2, %p220_p1 }
   0x8   :  { %p223_p4 = pnand %p222_p3, %p216_p0 }
   0xa   :  { %226 = shalt.err (!%p223_p4)
}
   0xb   :  { %21 = dma.hbm_to_vmem [thread:$0]  %s296_s1, 128, %s19_s13, [#allocation3]  }
   0xc   :  { %247 = dma.done.wait [#allocation3], 128  }
   0xd   :  { %248 = vsyncadd [#allocation3], 4294967168  ;;  %vm29_vm0 = vcmask 1043456   ;;  %v27_v0 = vld [vmem:[%s295_s0] sm:$0xf]  ;;  %v252_v7 = vmov 0   ;;  %v63_v24 = vlaneseq }
   0xe   :  { %v30_v1 = vsel %vm29_vm0, %v27_v0, 0.0  ;;  %203 = vset.pattern.permute.xlu1 %v252_v7  ;;  %v253_v11 = vmov 1   ;;  %v28_v12 = vld [vmem:[%s297_s2] sm:$0xf]  ;;  %s254_s19 = smov 1   ;;  %v255_v18 = vmov 0.0  }
   0xf   :  { %31 = vadd.xlane.f32.xlu0 %v30_v1  ;;  %188 = vmatprep.subr.mxu0 %v255_v18  ;;  %vm256_vm1 = vmmov 0   ;;  %s257_s20 = smov 127   ;;  %v64_v25 = vand.u32 127, %v63_v24  ;;  %v89_v32 = vld [vmem:[#allocation2] sm:$0x3f]  ;;  %vm90_vm4 = vcmask 97280  }
  0x10   :  { %204 = vset.pattern.permute.xlu0 %v253_v11  ;;  %192 = vmatprep.mubr.msk.f32.mxu0 %vm256_vm1, %v255_v18  ;;  %s258_s2 = smov [#allocation5]  }
  0x11   :  { %v69_v26 = vand.u32 15, %v64_v25  ;;  %s174_s21 = sshll.u32 %s258_s2, 4  ;;  %s175_s21 = int_to_ptr.vmem [resolvable:$true] %s174_s21 }
  0x12   :  { %s227_s22 = scalar_lea.vmem %s175_s21, 128  ;;  %p232_p6 = scmp.lt.s32.totalorder %s175_s21, %s175_s21 }
  0x13   :  { %vm83_vm2 = vcmp.lt.s32.totalorder %v69_v26, 15  ;;  %vm79_vm3 = vcmp.ge.s32.totalorder %v69_v26, 1  ;;  %p228_p5 = scmp.ne.s32.totalorder %s175_s21, %s227_s22  ;;  %p233_p7 = scmp.lt.s32.totalorder %s227_s22, %s227_s22 }
  0x15   :  { %p234_p8 = por %p233_p7, %p232_p6 }
  0x17   :  { %p235_p9 = pnand %p234_p8, %p228_p5 }
  0x98   :  { %v32_v2 = vpop.xlane.xlu0 %31 }
  0x99   :  { %v34_v3 = vmul.f32 0.0078125, %v32_v2 }
  0x9b   :  { %v35_v4 = vsub.f32 %v27_v0, %v34_v3 }
  0x9d   :  { %v36_v5 = vmul.f32 %v35_v4, %v35_v4 }
  0x9f   :  { %v37_v6 = vsel %vm29_vm0, %v36_v5, 0.0 }
  0xa0   :  { %38 = vadd.xlane.f32.xlu0 %v37_v6 }
 0x129   :  { %v39_v8 = vpop.xlane.xlu0 %38 }
 0x12a   :  { %v40_v9 = vmul.f32 0.0078125, %v39_v8 }
 0x12c   :  { %v41_v10 = vadd.f32 1e-05, %v40_v9 }
 0x12e   :  { %205 = vrsqrt.f32 %v41_v10 }
 0x13b   :  { %v206_v13 = vpop.eup %205 }
 0x13c   :  { %v43_v14 = vmul.f32 %v206_v13, %v28_v12 }
 0x13e   :  { %v44_v15 = vmul.f32 %v43_v14, %v34_v3 }
 0x140   :  { %46 = vrot.lane.b32.xlu1 %v44_v15, %s254_s19 }
 0x144   :  { %52 = vperm.xlu1 %203, %v43_v14  }
 0x1b2   :  { %v47_v16 = vpop.permute.xlu1 %46 }
 0x1b3   :  { %v49_v17 = vsub.f32 %v28_v12, %v47_v16 }
 0x1b5   :  { %58 = vperm.xlu0 %204, %v49_v17  }
 0x1bf   :  { %v53_v19 = vpop.permute.xlu1 %52 }
 0x1c0   :  { %v55_v20 = vmul.f32 %v53_v19, %v27_v0 }
 0x230   :  { %v59_v21 = vpop.permute.xlu0 %58 }
 0x231   :  { %v61_v22 = vadd.f32 %v59_v21, %v55_v20 }
 0x233   :  { %v62_v23 = vmax.f32 %v61_v22, 0.0 }
 0x235   :  { %81 = vrot.lane.b32.xlu1 %v62_v23, %s257_s20  ;;  %v86_v29 = vrot.slane %v62_v23, 4 }
 0x239   :  { %77 = vrot.lane.b32.xlu1 %v62_v23, %s254_s19 }
 0x2a7   :  { %v82_v27 = vpop.permute.xlu1 %81 }
 0x2a8   :  { %v84_v28 = vsel %vm83_vm2, %v82_v27, 0.0 }
 0x2a9   :  { %189 = vmatpush3.msk.msra.mxu0 %vm29_vm0, %v84_v28 }
 0x2aa   :  { %190 = vmatprep.subr.mxu0 %v255_v18 }
 0x2ab   :  { %v78_v30 = vpop.permute.xlu1 %77 }
 0x2ac   :  { %v80_v31 = vsel %vm79_vm3, %v78_v30, 0.0 }
 0x2ad   :  { %v88_v33 = vsel %vm29_vm0, %v80_v31, %v86_v29 }
 0x2ae   :  { %191 = vmatpush3.msra.mxu0 %v88_v33 }
 0x2af   :  { %193 = vmatmul.mubr.msk.f32.vlgmr.msra.gmra.mxu0 %vm90_vm4, %v89_v32 }
 0x36f   :  { %v163_v34 = vpop.f32.mrf.mxu0 }
 0x370   :  { %167 = vst [vmem:[#allocation5] sm:$0x3f] %v163_v34 }
 0x371   :  { %v194_v35 = vpop.f32.mrf.mxu0 }
 0x372   :  { %238 = shalt.err (!%p235_p9)
}
 0x373   :  { %177 = dma.vmem_to_hbm [thread:$0]  %s175_s21, 128, %s298_s3, [#allocation4]  }
 0x374   :  { %249 = dma.done.wait [#allocation4], 128  }
 0x375   :  { %250 = vsyncadd [#allocation4], 4294967168 }
 0x376   :  { %181 = vsyncpa [#allocation3], 1 }
 0x377   :  { %182 = vsyncpa [#allocation4], 1 }

</bundles_post_ra>
